<compile_context>
chip_gen: v5e
topology: v5e:2x2
jax: 0.10.0
libtpu: 0.0.40
codegen_flags: <defaults>
</compile_context>

<pallas_src>
import jax
import jax.numpy as jnp
from jax.experimental import pallas as pl
from jax.experimental.pallas import tpu as pltpu


def _round_up(v, m):
    return (v + m - 1) // m * m


def _cdiv(a, b):
    return (a + b - 1) // b


def _bitnet_matmul_kernel(scale_ref, x_ref, wt_ref, o_ref, acc_ref):
    k = pl.program_id(2)

    @pl.when(k == 0)
    def _():
        acc_ref[...] = jnp.zeros_like(acc_ref)

    # int8 {-1, 0, +1} -> bf16 is exact; the cast is VPU work that hides under
    # the MXU / weight DMA (weights are the HBM-bound operand for BitNet).
    acc_ref[...] += jnp.dot(x_ref[...], wt_ref[...].astype(jnp.bfloat16),
                            preferred_element_type=jnp.float32)

    @pl.when(k == pl.num_programs(2) - 1)
    def _():
        o_ref[...] = (acc_ref[...] * scale_ref[0]).astype(o_ref.dtype)


def prepare_bitnet_weights(w):
    """One-time weight prep; cache the results across forward calls.

    w: (N, K) weights (nn.Linear convention).
    Returns:
      w_bin_t: (K, N) int8 sign(w) transposed (torch.sign convention: 0 -> 0)
      scale:   (1,)  f32 mean(|w|)
    """
    w_f32 = w.astype(jnp.float32)
    scale = jnp.mean(jnp.abs(w_f32)).reshape((1,)).astype(jnp.float32)
    w_bin_t = jnp.sign(w_f32).astype(jnp.int8).T          # fused sign+cast+T
    return w_bin_t, scale


def bitnet_matmul(x, w_bin_t, scale, *, tm=512, tn=512, tk=1024, out_dtype=None):
    """y = (x @ w_bin_t) * scale with prepared int8 binarized weights.

    x: (M, K) activations, w_bin_t: (K, N) int8 in {-1,0,+1}, scale: (1,) f32.
    """
    M, K = x.shape
    K2, N = w_bin_t.shape
    assert K == K2
    out_dtype = x.dtype if out_dtype is None else out_dtype

    # Activation quantization to bf16 (documented layer semantics); the f32
    # accumulator in-kernel keeps the reduction exact.
    x_q = x.astype(jnp.bfloat16)

    # ---- Tile selection (clamped to the aligned problem size) --------------
    tm = min(tm, _round_up(M, 16))      # bf16 sublane packing (16, 128)
    tn = min(tn, _round_up(N, 128))     # lane-dense output tile
    tk = min(tk, _round_up(K, 128))     # int8 needs >=32 sublanes -> 128 ok

    # v7x has 2 TensorCores that only engage when a "parallel" grid axis has
    # >= 2 blocks; split N if the parallel grid would otherwise be 1x1.
    if _cdiv(M, tm) * _cdiv(N, tn) == 1 and tn % 256 == 0:
        tn //= 2

    Mp, Np, Kp = _round_up(M, tm), _round_up(N, tn), _round_up(K, tk)
    if (Mp, Kp) != (M, K):
        x_q = jnp.pad(x_q, ((0, Mp - M), (0, Kp - K)))
    if (Kp, Np) != (K, N):
        w_bin_t = jnp.pad(w_bin_t, ((0, Kp - K), (0, Np - N)))

    grid = (Mp // tm, Np // tn, Kp // tk)

    # VMEM budget: double-buffered bf16 x tile + int8 weight tile + output
    # tile, plus the resident f32 accumulator, with 2x headroom.  Never claim
    # more than 48 MiB (v7x physical VMEM is 64 MiB per TensorCore).
    out_isz = jnp.dtype(out_dtype).itemsize
    need = (2 * tm * tk * 2          # x bf16
            + 2 * tk * tn * 1        # W_bin^T int8
            + 2 * tm * tn * out_isz  # output
            + tm * tn * 4)           # f32 accumulator
    vmem_limit = int(min(max(2 * need, 32 * 1024 * 1024), 48 * 1024 * 1024))

    y_padded = pl.pallas_call(
        _bitnet_matmul_kernel,
        out_shape=jax.ShapeDtypeStruct((Mp, Np), out_dtype),
        grid_spec=pltpu.PrefetchScalarGridSpec(
            num_scalar_prefetch=0,
            grid=grid,
            in_specs=[
                # Global scale: scalar in SMEM (no padded VMEM tile, free read).
                pl.BlockSpec(memory_space=pltpu.MemorySpace.SMEM),
                pl.BlockSpec((tm, tk), lambda i, j, k: (i, k)),   # x tile (bf16)
                pl.BlockSpec((tk, tn), lambda i, j, k: (k, j)),   # sign(W)^T (int8)
            ],
            out_specs=pl.BlockSpec((tm, tn), lambda i, j, k: (i, j)),
            scratch_shapes=[pltpu.VMEM((tm, tn), jnp.float32)],
        ),
        compiler_params=pltpu.CompilerParams(
            dimension_semantics=("parallel", "parallel", "arbitrary"),
            vmem_limit_bytes=vmem_limit,
        ),
    )(scale, x_q, w_bin_t)

    return y_padded[:M, :N]


def bitnet_linear(x, w, **kwargs):
    """Convenience path: prep + matmul.  For inference, call
    prepare_bitnet_weights once and reuse with bitnet_matmul."""
    w_bin_t, scale = prepare_bitnet_weights(w)
    return bitnet_matmul(x, w_bin_t, scale, **kwargs)


def bitnet_linear_ref(x, w):
    scale = jnp.mean(jnp.abs(w))
    return (x @ jnp.sign(w).T) * scale


if __name__ == "__main__":
    key = jax.random.PRNGKey(0)
    kx, kw, kx2, kw2 = jax.random.split(key, 4)

    # Small shapes; non-multiples of the tiles to exercise padding + slicing.
    batch, in_features, out_features = 40, 320, 384
    x = jax.random.normal(kx, (batch, in_features), dtype=jnp.float32)
    w = jax.random.normal(kw, (out_features, in_features), dtype=jnp.float32) * 0.1

    y_ref = bitnet_linear_ref(x, w)

    # Cached-weight (inference) path: prep once, reuse for both tile configs.
    w_bin_t, scale = prepare_bitnet_weights(w)

    # 1) Default (large) tiles — clamped to the problem size.
    y_default = jax.block_until_ready(bitnet_matmul(x, w_bin_t, scale))
    # 2) Small explicit tiles — exercises multi-step M/N/K grid + K accumulation.
    y_tiled = jax.block_until_ready(
        bitnet_matmul(x, w_bin_t, scale, tm=16, tn=128, tk=128))

    # 3) Shape that triggers the v7x parallel-grid split heuristic (tn halved).
    x2 = jax.random.normal(kx2, (8, 256), dtype=jnp.float32)
    w2 = jax.random.normal(kw2, (512, 256), dtype=jnp.float32) * 0.1
    y2_ref = bitnet_linear_ref(x2, w2)
    y2 = jax.block_until_ready(bitnet_linear(x2, w2))

    # bf16 activations loosen the tolerance (the +/-1/0 weights stay exact).
    assert y_default.shape == y_ref.shape and y_tiled.shape == y_ref.shape
    assert y2.shape == y2_ref.shape
    assert jnp.allclose(y_default, y_ref, atol=5e-2, rtol=5e-2), "default-tile mismatch"
    assert jnp.allclose(y_tiled, y_ref, atol=5e-2, rtol=5e-2), "small-tile mismatch"
    assert jnp.allclose(y2, y2_ref, atol=5e-2, rtol=5e-2), "split-tn mismatch"

    print("KERNEL_OK")
</pallas_src>

<mosaic_0001>
module attributes {stable_mosaic.version = 11 : i64} {
  func.func @_bitnet_matmul_kernel(%arg0: i32, %arg1: i32, %arg2: i32, %arg3: memref<1xf32, #tpu.memory_space<smem>>, %arg4: memref<48x384xbf16, #tpu.memory_space<vmem>>, %arg5: memref<384x384xi8, #tpu.memory_space<vmem>>, %arg6: memref<48x384xf32, #tpu.memory_space<vmem>>, %arg7: memref<48x384xf32, #tpu.memory_space<vmem>>) attributes {dimension_semantics = [#tpu.dimension_semantics<parallel>, #tpu.dimension_semantics<parallel>, #tpu.dimension_semantics<arbitrary>], iteration_bounds = array<i64: 1, 1, 1>, scalar_prefetch = 0 : i64, scratch_operands = 1 : i64, tpu.core_type = #tpu.core_type<tc>, window_params = [{transform_indices = @transform_0, window_bounds = array<i64: 1>}, {transform_indices = @transform_1, window_bounds = array<i64: 48, 384>}, {transform_indices = @transform_2, window_bounds = array<i64: 384, 384>}, {transform_indices = @transform_3, window_bounds = array<i64: 48, 384>}]} {
    %c0_i32 = arith.constant 0 : i32
    %0 = arith.cmpi eq, %arg2, %c0_i32 : i32
    %1 = arith.extui %0 : i1 to i32
    %c0_i32_0 = arith.constant 0 : i32
    %2 = arith.cmpi ne, %1, %c0_i32_0 : i32
    scf.if %2 {
      %cst_10 = arith.constant 0.000000e+00 : f32
      %13 = vector.broadcast %cst_10 : f32 to vector<48x384xf32>
      %c0_11 = arith.constant 0 : index
      %c0_12 = arith.constant 0 : index
      %14 = vector.load %arg7[%c0_11, %c0_12] : memref<48x384xf32, #tpu.memory_space<vmem>>, vector<48x384xf32>
      tpu.vector_store %arg7[%c0_11, %c0_12], %13 {strides = array<i32>} : memref<48x384xf32, #tpu.memory_space<vmem>>, vector<48x384xf32>,
    } else {
    }
    %c0 = arith.constant 0 : index
    %c0_1 = arith.constant 0 : index
    %3 = vector.load %arg7[%c0, %c0_1] : memref<48x384xf32, #tpu.memory_space<vmem>>, vector<48x384xf32>
    %c0_2 = arith.constant 0 : index
    %c0_3 = arith.constant 0 : index
    %4 = vector.load %arg4[%c0_2, %c0_3] : memref<48x384xbf16, #tpu.memory_space<vmem>>, vector<48x384xbf16>
    %c0_4 = arith.constant 0 : index
    %c0_5 = arith.constant 0 : index
    %5 = vector.load %arg5[%c0_4, %c0_5] : memref<384x384xi8, #tpu.memory_space<vmem>>, vector<384x384xi8>
    %6 = arith.sitofp %5 : vector<384x384xi8> to vector<384x384xbf16>
    %cst = arith.constant dense<0.000000e+00> : vector<48x384xf32>
    %7 = tpu.matmul %4, %6, %cst {dimension_numbers = #tpu.dot_dimension_numbers<[1], [0], [0], [1], [0, 0, 1, 1], [], []>} : vector<48x384xbf16>, vector<384x384xbf16>, vector<48x384xf32> -> vector<48x384xf32>
    %8 = arith.addf %3, %7 : vector<48x384xf32>
    %c0_6 = arith.constant 0 : index
    %c0_7 = arith.constant 0 : index
    %9 = vector.load %arg7[%c0_6, %c0_7] : memref<48x384xf32, #tpu.memory_space<vmem>>, vector<48x384xf32>
    tpu.vector_store %arg7[%c0_6, %c0_7], %8 {strides = array<i32>} : memref<48x384xf32, #tpu.memory_space<vmem>>, vector<48x384xf32>,
    %c0_i32_8 = arith.constant 0 : i32
    %10 = arith.cmpi eq, %arg2, %c0_i32_8 : i32
    %11 = arith.extui %10 : i1 to i32
    %c0_i32_9 = arith.constant 0 : i32
    %12 = arith.cmpi ne, %11, %c0_i32_9 : i32
    scf.if %12 {
      %c0_10 = arith.constant 0 : index
      %c0_11 = arith.constant 0 : index
      %13 = vector.load %arg7[%c0_10, %c0_11] : memref<48x384xf32, #tpu.memory_space<vmem>>, vector<48x384xf32>
      %c0_12 = arith.constant 0 : index
      %14 = memref.load %arg3[%c0_12] : memref<1xf32, #tpu.memory_space<smem>>
      %15 = vector.broadcast %14 : f32 to vector<48x384xf32>
      %16 = arith.mulf %13, %15 : vector<48x384xf32>
      %c0_13 = arith.constant 0 : index
      %c0_14 = arith.constant 0 : index
      %17 = vector.load %arg6[%c0_13, %c0_14] : memref<48x384xf32, #tpu.memory_space<vmem>>, vector<48x384xf32>
      tpu.vector_store %arg6[%c0_13, %c0_14], %16 {strides = array<i32>} : memref<48x384xf32, #tpu.memory_space<vmem>>, vector<48x384xf32>,
    } else {
    }
    return
  }
  func.func @transform_0(%arg0: i32, %arg1: i32, %arg2: i32) -> i32 {
    %c0_i32 = arith.constant 0 : i32
    %c0_i32_0 = arith.constant 0 : i32
    return %c0_i32 : i32
  }
  func.func @transform_1(%arg0: i32, %arg1: i32, %arg2: i32) -> (i32, i32) {
    %c0_i32 = arith.constant 0 : i32
    return %arg0, %arg2 : i32, i32
  }
  func.func @transform_2(%arg0: i32, %arg1: i32, %arg2: i32) -> (i32, i32) {
    %c0_i32 = arith.constant 0 : i32
    return %arg2, %arg1 : i32, i32
  }
  func.func @transform_3(%arg0: i32, %arg1: i32, %arg2: i32) -> (i32, i32) {
    %c0_i32 = arith.constant 0 : i32
    return %arg0, %arg1 : i32, i32
  }
}

</mosaic_0001>

<bundles_post_ra>
// kernel: tpu_custom_call.1
= control target key start
LH: loop header
LB: loop body
LE: loop exit
PB: predicated region body
PF: predicated region fallthrough
CT: control target
= control target key end

     0   :  { %9 = vsyncpa [#allocation5], 0  ;;  %s1162_s0 = inlined_call_operand.<no memory space> [shape: f32[1], index: 0, kind: input, shape index: {}]   ;;  %s1163_s1 = inlined_call_operand.hbm [shape: bf16[48,384], index: 1, kind: input, shape index: {}]   ;;  %s1164_s2 = inlined_call_operand.hbm [shape: s8[384,384], index: 2, kind: input, shape index: {}]   ;;  %s1165_s3 = inlined_call_operand.hbm [shape: f32[48,384], index: 3, kind: output, shape index: {}]  }
   0x1   :  { %10 = vsyncpa [#allocation8], 0 }
   0x2   :  { %11 = vsyncpa [#allocation6], 0  ;;  %s18_s14 = sshll.u32 %s1163_s1, 4  ;;  %s1021_s15 = smov [#allocation4]   ;;  %s19_s14 = int_to_ptr.hbm [resolvable:$true] %s18_s14 }
   0x3   :  { %s20_s16 = sshll.u32 %s1021_s15, 4  ;;  %s31_s19 = sshll.u32 %s1164_s2, 4  ;;  %s21_s16 = int_to_ptr.vmem [resolvable:$true] %s20_s16  ;;  %s32_s19 = int_to_ptr.hbm [resolvable:$true] %s31_s19 }
   0x4   :  { %s1022_s20 = smov 192   ;;  %s1023_s21 = smov 12  }
   0x5   :  { %26 = dma.hbm_to_vmem [thread:$0]  %s19_s14, 1152, %s21_s16, [#allocation5], %s1022_s20, %s1022_s20, %s1023_s21  }
   0x6   :  { %s1024_s22 = smov [#allocation7]   ;;  %s1025_s24 = smov 384  }
   0x7   :  { %s33_s23 = sshll.u32 %s1024_s22, 4  ;;  %s1026_s25 = smov 24   ;;  %s34_s23 = int_to_ptr.vmem [resolvable:$true] %s33_s23 }
   0x8   :  { %39 = dma.hbm_to_vmem [thread:$0]  %s32_s19, 4608, %s34_s23, [#allocation8], %s1025_s24, %s1025_s24, %s1026_s25  }
   0x9   :  { %1015 = dma.done.wait [#allocation5], 1152  }
   0xa   :  { %1016 = vsyncadd [#allocation5], 4294966144 }
   0xb   :  { %1017 = dma.done.wait [#allocation8], 4608  }
   0xc   :  { %1018 = vsyncadd [#allocation8], 4294962688  ;;  %v109_v0 = vld [vmem:[#allocation7 + $0x48] sm:$0xff]  ;;  %v110_v2 = vld [vmem:[#allocation7 + $0x50] sm:$0xff]  ;;  %s861_s29 = sshll.u32 %s1165_s3, 4  ;;  %s862_s29 = int_to_ptr.hbm [resolvable:$true] %s861_s29 }
   0xd   :  { %v133_v1 = vld [vmem:[#allocation7 + $0x108] sm:$0xff]  ;;  %v178_v3 = vunpack.c.2.s8 %v109_v0  ;;  %v181_v4 = vunpack.c.3.s8 %v109_v0  ;;  %v179_v7 = vunpack.c.2.s8 %v110_v2  ;;  %v182_v8 = vunpack.c.3.s8 %v110_v2  ;;  %v106_v19 = vld [vmem:[#allocation7 + $0x30] sm:$0xff]  ;;  %v107_v29 = vld [vmem:[#allocation7 + $0x38] sm:$0xff] }
   0xe   :  { %v274_v5 = vunpack.c.2.s8 %v133_v1  ;;  %v277_v6 = vunpack.c.3.s8 %v133_v1  ;;  %v172_v9 = vunpack.c.0.s8 %v109_v0  ;;  %v175_v10 = vunpack.c.1.s8 %v109_v0  ;;  %v130_v24 = vld [vmem:[#allocation7 + $0xf0] sm:$0xff]  ;;  %v103_v50 = vld [vmem:[#allocation7 + $0x18] sm:$0xff]  ;;  %v104_v0 = vld [vmem:[#allocation7 + $0x20] sm:$0xff] }
   0xf   :  { %v322_v11 = vcvt.s32.f32 %v178_v3  ;;  %v325_v12 = vcvt.s32.f32 %v181_v4  ;;  %v323_v15 = vcvt.s32.f32 %v179_v7  ;;  %v326_v16 = vcvt.s32.f32 %v182_v8  ;;  %v127_v59 = vld [vmem:[#allocation7 + $0xd8] sm:$0xff] }
  0x10   :  { %v418_v13 = vcvt.s32.f32 %v274_v5  ;;  %v421_v14 = vcvt.s32.f32 %v277_v6  ;;  %v316_v17 = vcvt.s32.f32 %v172_v9  ;;  %v319_v18 = vcvt.s32.f32 %v175_v10 }
  0x11   :  { %v445_v20 = vpack.c.bf16 %v325_v12, %v322_v11  ;;  %v268_v22 = vunpack.c.0.s8 %v133_v1  ;;  %v271_v23 = vunpack.c.1.s8 %v133_v1  ;;  %v446_v25 = vpack.c.bf16 %v326_v16, %v323_v15 }
  0x12   :  { %v493_v21 = vpack.c.bf16 %v421_v14, %v418_v13  ;;  %v442_v26 = vpack.c.bf16 %v319_v18, %v316_v17  ;;  %v173_v27 = vunpack.c.0.s8 %v110_v2  ;;  %v176_v28 = vunpack.c.1.s8 %v110_v2 }
  0x13   :  { %544 = vmatpush.bf16.msra.mxu0 %v445_v20  ;;  %920 = vmatpush.bf16.msra.mxu1 %v445_v20  ;;  %v412_v30 = vcvt.s32.f32 %v268_v22  ;;  %v415_v31 = vcvt.s32.f32 %v271_v23  ;;  %v166_v32 = vunpack.c.2.s8 %v106_v19  ;;  %v169_v33 = vunpack.c.3.s8 %v106_v19 }
  0x14   :  { %592 = vmatpush.bf16.msra.mxu2 %v493_v21  ;;  %616 = vmatpush.bf16.msra.mxu3 %v446_v25  ;;  %v317_v34 = vcvt.s32.f32 %v173_v27  ;;  %v320_v35 = vcvt.s32.f32 %v176_v28  ;;  %v262_v36 = vunpack.c.2.s8 %v130_v24  ;;  %v265_v37 = vunpack.c.3.s8 %v130_v24  ;;  %v100_v21 = vld [vmem:[#allocation7] sm:$0xff] }
  0x15   :  { %v490_v38 = vpack.c.bf16 %v415_v31, %v412_v30  ;;  %v310_v39 = vcvt.s32.f32 %v166_v32  ;;  %v313_v40 = vcvt.s32.f32 %v169_v33  ;;  %v167_v41 = vunpack.c.2.s8 %v107_v29  ;;  %v101_v31 = vld [vmem:[#allocation7 + $0x8] sm:$0xff] }
  0x16   :  { %v443_v42 = vpack.c.bf16 %v320_v35, %v317_v34  ;;  %v406_v43 = vcvt.s32.f32 %v262_v36  ;;  %v409_v44 = vcvt.s32.f32 %v265_v37  ;;  %v170_v45 = vunpack.c.3.s8 %v107_v29 }
  0x17   :  { %545 = vmatpush.bf16.msra.mxu0 %v442_v26  ;;  %921 = vmatpush.bf16.msra.mxu1 %v442_v26  ;;  %v439_v46 = vpack.c.bf16 %v313_v40, %v310_v39  ;;  %v311_v47 = vcvt.s32.f32 %v167_v41  ;;  %v160_v48 = vunpack.c.0.s8 %v106_v19  ;;  %v163_v49 = vunpack.c.1.s8 %v106_v19  ;;  %v124_v26 = vld [vmem:[#allocation7 + $0xc0] sm:$0xff] }
  0x18   :  { %593 = vmatpush.bf16.msra.mxu2 %v490_v38  ;;  %617 = vmatpush.bf16.msra.mxu3 %v443_v42  ;;  %v487_v51 = vpack.c.bf16 %v409_v44, %v406_v43  ;;  %v314_v52 = vcvt.s32.f32 %v170_v45  ;;  %v256_v53 = vunpack.c.0.s8 %v130_v24  ;;  %v259_v54 = vunpack.c.1.s8 %v130_v24 }
  0x19   :  { %v304_v55 = vcvt.s32.f32 %v160_v48  ;;  %v307_v56 = vcvt.s32.f32 %v163_v49  ;;  %v161_v57 = vunpack.c.0.s8 %v107_v29  ;;  %v164_v58 = vunpack.c.1.s8 %v107_v29 }
  0x1a   :  { %v440_v60 = vpack.c.bf16 %v314_v52, %v311_v47  ;;  %v400_v61 = vcvt.s32.f32 %v256_v53  ;;  %v403_v62 = vcvt.s32.f32 %v259_v54  ;;  %v154_v63 = vunpack.c.2.s8 %v103_v50  ;;  %v121_v52 = vld [vmem:[#allocation7 + $0xa8] sm:$0xff] }
  0x1b   :  { %546 = vmatpush.bf16.msra.mxu0 %v439_v46  ;;  %922 = vmatpush.bf16.msra.mxu1 %v439_v46  ;;  %v436_v1 = vpack.c.bf16 %v307_v56, %v304_v55  ;;  %v305_v2 = vcvt.s32.f32 %v161_v57  ;;  %v308_v3 = vcvt.s32.f32 %v164_v58  ;;  %v157_v4 = vunpack.c.3.s8 %v103_v50  ;;  %v877_v57 = vld [vmem:[#allocation4] sm:$0xf] }
  0x1c   :  { %594 = vmatpush.bf16.msra.mxu2 %v487_v51  ;;  %618 = vmatpush.bf16.msra.mxu3 %v440_v60  ;;  %v484_v5 = vpack.c.bf16 %v403_v62, %v400_v61  ;;  %v298_v6 = vcvt.s32.f32 %v154_v63  ;;  %v250_v7 = vunpack.c.2.s8 %v127_v59  ;;  %v253_v8 = vunpack.c.3.s8 %v127_v59  ;;  %v912_v62 = vld [vmem:[#allocation4 + $0x8] sm:$0xf0]  ;;  %v885_v63 = vld [vmem:[#allocation4 + $0x8] sm:$0xf] }
  0x1d   :  { %v437_v9 = vpack.c.bf16 %v308_v3, %v305_v2  ;;  %v301_v10 = vcvt.s32.f32 %v157_v4  ;;  %v155_v11 = vunpack.c.2.s8 %v104_v0  ;;  %v158_v12 = vunpack.c.3.s8 %v104_v0 }
  0x1e   :  { %v394_v13 = vcvt.s32.f32 %v250_v7  ;;  %v397_v14 = vcvt.s32.f32 %v253_v8  ;;  %v148_v15 = vunpack.c.0.s8 %v103_v50  ;;  %v151_v16 = vunpack.c.1.s8 %v103_v50 }
  0x1f   :  { %547 = vmatpush.bf16.msra.mxu0 %v436_v1  ;;  %923 = vmatpush.bf16.msra.mxu1 %v436_v1  ;;  %v433_v17 = vpack.c.bf16 %v301_v10, %v298_v6  ;;  %v299_v18 = vcvt.s32.f32 %v155_v11  ;;  %v302_v19 = vcvt.s32.f32 %v158_v12  ;;  %v244_v20 = vunpack.c.0.s8 %v127_v59  ;;  %v901_v10 = vld [vmem:[#allocation4 + $0x30] sm:$0xf]  ;;  %v918_v11 = vld [vmem:[#allocation4 + $0x38] sm:$0xf0] }
  0x20   :  { %595 = vmatpush.bf16.msra.mxu2 %v484_v5  ;;  %619 = vmatpush.bf16.msra.mxu3 %v437_v9  ;;  %v481_v22 = vpack.c.bf16 %v397_v14, %v394_v13  ;;  %v292_v23 = vcvt.s32.f32 %v148_v15  ;;  %v295_v24 = vcvt.s32.f32 %v151_v16  ;;  %v247_v25 = vunpack.c.1.s8 %v127_v59  ;;  %v122_v5 = vld [vmem:[#allocation7 + $0xb0] sm:$0xff] }
  0x21   :  { %v434_v27 = vpack.c.bf16 %v302_v19, %v299_v18  ;;  %v388_v28 = vcvt.s32.f32 %v244_v20  ;;  %v149_v29 = vunpack.c.0.s8 %v104_v0  ;;  %v152_v30 = vunpack.c.1.s8 %v104_v0  ;;  %v913_v0 = vld [vmem:[#allocation4 + $0x10] sm:$0xf0]  ;;  %v118_v20 = vld [vmem:[#allocation7 + $0x90] sm:$0xff] }
  0x22   :  { %v430_v32 = vpack.c.bf16 %v295_v24, %v292_v23  ;;  %v391_v33 = vcvt.s32.f32 %v247_v25  ;;  %v142_v34 = vunpack.c.2.s8 %v100_v21  ;;  %v145_v35 = vunpack.c.3.s8 %v100_v21  ;;  %v1063_v25 = vld [vmem:[#allocation7 + $0x58] sm:$0xff] }
  0x23   :  { %548 = vmatpush.bf16.msra.mxu0 %v433_v17  ;;  %924 = vmatpush.bf16.msra.mxu1 %v433_v17  ;;  %v293_v36 = vcvt.s32.f32 %v149_v29  ;;  %v296_v37 = vcvt.s32.f32 %v152_v30  ;;  %v238_v38 = vunpack.c.2.s8 %v124_v26  ;;  %v241_v39 = vunpack.c.3.s8 %v124_v26  ;;  %v119_v30 = vld [vmem:[#allocation7 + $0x98] sm:$0xff] }
  0x24   :  { %596 = vmatpush.bf16.msra.mxu2 %v481_v22  ;;  %620 = vmatpush.bf16.msra.mxu3 %v434_v27  ;;  %v478_v40 = vpack.c.bf16 %v391_v33, %v388_v28  ;;  %v286_v41 = vcvt.s32.f32 %v142_v34  ;;  %v289_v42 = vcvt.s32.f32 %v145_v35  ;;  %v143_v43 = vunpack.c.2.s8 %v101_v31 }
  0x25   :  { %v431_v44 = vpack.c.bf16 %v296_v37, %v293_v36  ;;  %v382_v45 = vcvt.s32.f32 %v238_v38  ;;  %v385_v46 = vcvt.s32.f32 %v241_v39  ;;  %v146_v47 = vunpack.c.3.s8 %v101_v31 }
  0x26   :  { %v427_v48 = vpack.c.bf16 %v289_v42, %v286_v41  ;;  %v287_v49 = vcvt.s32.f32 %v143_v43  ;;  %v136_v50 = vunpack.c.0.s8 %v100_v21  ;;  %v139_v51 = vunpack.c.1.s8 %v100_v21 }
  0x27   :  { %549 = vmatpush.bf16.msra.mxu0 %v430_v32  ;;  %925 = vmatpush.bf16.msra.mxu1 %v430_v32  ;;  %v475_v53 = vpack.c.bf16 %v385_v46, %v382_v45  ;;  %v290_v54 = vcvt.s32.f32 %v146_v47  ;;  %v232_v55 = vunpack.c.0.s8 %v124_v26  ;;  %v235_v56 = vunpack.c.1.s8 %v124_v26 }
  0x28   :  { %597 = vmatpush.bf16.msra.mxu2 %v478_v40  ;;  %621 = vmatpush.bf16.msra.mxu3 %v431_v44  ;;  %v280_v58 = vcvt.s32.f32 %v136_v50  ;;  %v283_v59 = vcvt.s32.f32 %v139_v51  ;;  %v137_v60 = vunpack.c.0.s8 %v101_v31  ;;  %v140_v61 = vunpack.c.1.s8 %v101_v31 }
  0x29   :  { %v428_v1 = vpack.c.bf16 %v290_v54, %v287_v49  ;;  %v376_v2 = vcvt.s32.f32 %v232_v55  ;;  %v379_v3 = vcvt.s32.f32 %v235_v56  ;;  %v226_v4 = vunpack.c.2.s8 %v121_v52  ;;  %v115_v55 = vld [vmem:[#allocation7 + $0x78] sm:$0xff]  ;;  %v889_v56 = vld [vmem:[#allocation4 + $0x18] sm:$0xf] }
  0x2a   :  { %v424_v6 = vpack.c.bf16 %v283_v59, %v280_v58  ;;  %v281_v7 = vcvt.s32.f32 %v137_v60  ;;  %v284_v8 = vcvt.s32.f32 %v140_v61  ;;  %v229_v9 = vunpack.c.3.s8 %v121_v52  ;;  %v915_v61 = vld [vmem:[#allocation4 + $0x20] sm:$0xf0] }
  0x2b   :  { %550 = vmatpush.bf16.msra.mxu0 %v427_v48  ;;  %926 = vmatpush.bf16.msra.mxu1 %v427_v48  ;;  %v472_v12 = vpack.c.bf16 %v379_v3, %v376_v2  ;;  %v370_v13 = vcvt.s32.f32 %v226_v4  ;;  %v1057_v14 = vor.u32 %v912_v62, %v877_v57  ;;  %v1059_v15 = vor.u32 %v913_v0, %v885_v63  ;;  %v897_v62 = vld [vmem:[#allocation4 + $0x20] sm:$0xf]  ;;  %v916_v63 = vld [vmem:[#allocation4 + $0x28] sm:$0xf0] }
  0x2c   :  { %598 = vmatpush.bf16.msra.mxu2 %v475_v53  ;;  %622 = vmatpush.bf16.msra.mxu3 %v428_v1  ;;  %v425_v16 = vpack.c.bf16 %v284_v8, %v281_v7  ;;  %v373_v17 = vcvt.s32.f32 %v229_v9  ;;  %v227_v18 = vunpack.c.2.s8 %v122_v5  ;;  %v230_v19 = vunpack.c.3.s8 %v122_v5  ;;  %v116_v4 = vld [vmem:[#allocation7 + $0x80] sm:$0xff]  ;;  %v123_v9 = vld [vmem:[#allocation7 + $0xb8] sm:$0xff] }
  0x2d   :  { %v220_v21 = vunpack.c.0.s8 %v121_v52  ;;  %v223_v22 = vunpack.c.1.s8 %v121_v52  ;;  %v1061_v23 = vor.u32 %v918_v11, %v901_v10  ;;  %v221_v24 = vunpack.c.0.s8 %v122_v5 }
  0x2e   :  { %v469_v26 = vpack.c.bf16 %v373_v17, %v370_v13  ;;  %v371_v27 = vcvt.s32.f32 %v227_v18  ;;  %v374_v28 = vcvt.s32.f32 %v230_v19  ;;  %v224_v29 = vunpack.c.1.s8 %v122_v5 }
  0x2f   :  { %551 = vmatpush.bf16.msra.mxu0 %v424_v6  ;;  %927 = vmatpush.bf16.msra.mxu1 %v424_v6  ;;  %v364_v31 = vcvt.s32.f32 %v220_v21  ;;  %v367_v32 = vcvt.s32.f32 %v223_v22  ;;  %v365_v33 = vcvt.s32.f32 %v221_v24  ;;  %v214_v34 = vunpack.c.2.s8 %v118_v20 }
  0x30   :  { %599 = vmatpush.bf16.msra.mxu2 %v472_v12  ;;  %623 = vmatpush.bf16.msra.mxu3 %v425_v16  ;;  %v470_v35 = vpack.c.bf16 %v374_v28, %v371_v27  ;;  %v368_v36 = vcvt.s32.f32 %v224_v29  ;;  %v217_v37 = vunpack.c.3.s8 %v118_v20  ;;  %v180_v38 = vunpack.c.2.s8 %v1063_v25 }
  0x31   :  { %v466_v39 = vpack.c.bf16 %v367_v32, %v364_v31  ;;  %v358_v40 = vcvt.s32.f32 %v214_v34  ;;  %v183_v41 = vunpack.c.3.s8 %v1063_v25  ;;  %v215_v42 = vunpack.c.2.s8 %v119_v30 }
  0x32   :  { %552 = vmatmul.bf16.vlgmr.msra.gmra.mxu0 %v1057_v14  ;;  %562 = vmatmul.bf16.vlgmr.msra.gmra.mxu1 %v1061_v23  ;;  %v467_v43 = vpack.c.bf16 %v368_v36, %v365_v33  ;;  %v361_v44 = vcvt.s32.f32 %v217_v37  ;;  %v324_v45 = vcvt.s32.f32 %v180_v38  ;;  %v218_v46 = vunpack.c.3.s8 %v119_v30  ;;  %v112_v38 = vld [vmem:[#allocation7 + $0x60] sm:$0xff] }
  0x33   :  { %568 = vmatpush.bf16.msrb.mxu1 %v469_v26  ;;  %600 = vmatmul.bf16.vlgmr.msra.gmra.mxu2 %v1059_v15  ;;  %v327_v47 = vcvt.s32.f32 %v183_v41  ;;  %v359_v48 = vcvt.s32.f32 %v215_v42  ;;  %v208_v49 = vunpack.c.0.s8 %v118_v20  ;;  %v211_v50 = vunpack.c.1.s8 %v118_v20  ;;  %v1077_v20 = vld [vmem:[#allocation7 + $0x40] sm:$0xff] }
  0x34   :  { %624 = vmatmul.bf16.vlgmr.msra.gmra.mxu3 %v1057_v14  ;;  %640 = vmatpush.bf16.msrb.mxu0 %v470_v35  ;;  %v463_v51 = vpack.c.bf16 %v361_v44, %v358_v40  ;;  %v362_v52 = vcvt.s32.f32 %v218_v46  ;;  %v209_v53 = vunpack.c.0.s8 %v119_v30  ;;  %v212_v54 = vunpack.c.1.s8 %v119_v30 }
  0x35   :  { %v447_v57 = vpack.c.bf16 %v327_v47, %v324_v45  ;;  %v352_v58 = vcvt.s32.f32 %v208_v49  ;;  %v355_v59 = vcvt.s32.f32 %v211_v50  ;;  %v174_v60 = vunpack.c.0.s8 %v1063_v25 }
  0x36   :  { %v464_v0 = vpack.c.bf16 %v362_v52, %v359_v48  ;;  %v353_v1 = vcvt.s32.f32 %v209_v53  ;;  %v356_v2 = vcvt.s32.f32 %v212_v54  ;;  %v177_v3 = vunpack.c.1.s8 %v1063_v25 }
  0x37   :  { %569 = vmatpush.bf16.msrb.mxu1 %v466_v39  ;;  %688 = vmatpush.bf16.msrb.mxu2 %v447_v57  ;;  %v460_v5 = vpack.c.bf16 %v355_v59, %v352_v58  ;;  %v318_v6 = vcvt.s32.f32 %v174_v60  ;;  %v202_v7 = vunpack.c.2.s8 %v115_v55  ;;  %v205_v8 = vunpack.c.3.s8 %v115_v55 }
  0x38   :  { %641 = vmatpush.bf16.msrb.mxu0 %v467_v43  ;;  %v461_v10 = vpack.c.bf16 %v356_v2, %v353_v1  ;;  %v321_v11 = vcvt.s32.f32 %v177_v3  ;;  %v1073_v12 = vor.u32 %v915_v61, %v889_v56  ;;  %v1075_v13 = vor.u32 %v916_v63, %v897_v62  ;;  %v113_v43 = vld [vmem:[#allocation7 + $0x68] sm:$0xff]  ;;  %v120_v56 = vld [vmem:[#allocation7 + $0xa0] sm:$0xff]  ;;  %v911_v1 = vld [vmem:[#allocation4 + $0x4] sm:$0xf] }
  0x39   :  { %v346_v16 = vcvt.s32.f32 %v202_v7  ;;  %v349_v17 = vcvt.s32.f32 %v205_v8  ;;  %v203_v18 = vunpack.c.2.s8 %v116_v4  ;;  %v206_v19 = vunpack.c.3.s8 %v116_v4  ;;  %v879_v2 = vld [vmem:[#allocation4 + $0xc] sm:$0xf0] }
  0x3a   :  { %v444_v21 = vpack.c.bf16 %v321_v11, %v318_v6  ;;  %v228_v22 = vunpack.c.2.s8 %v123_v9  ;;  %v231_v24 = vunpack.c.3.s8 %v123_v9  ;;  %v196_v25 = vunpack.c.0.s8 %v115_v55  ;;  %v134_v11 = vld [vmem:[#allocation7 + $0x110] sm:$0xff] }
  0x3b   :  { %570 = vmatpush.bf16.msrb.mxu1 %v463_v51  ;;  %v457_v26 = vpack.c.bf16 %v349_v17, %v346_v16  ;;  %v347_v27 = vcvt.s32.f32 %v203_v18  ;;  %v350_v28 = vcvt.s32.f32 %v206_v19  ;;  %v199_v29 = vunpack.c.1.s8 %v115_v55 }
  0x3c   :  { %642 = vmatpush.bf16.msrb.mxu0 %v464_v0  ;;  %689 = vmatpush.bf16.msrb.mxu2 %v444_v21  ;;  %v372_v30 = vcvt.s32.f32 %v228_v22  ;;  %v375_v31 = vcvt.s32.f32 %v231_v24  ;;  %v340_v32 = vcvt.s32.f32 %v196_v25  ;;  %v168_v33 = vunpack.c.2.s8 %v1077_v20  ;;  %v105_v25 = vld [vmem:[#allocation7 + $0x28] sm:$0xff] }
  0x3d   :  { %v458_v34 = vpack.c.bf16 %v350_v28, %v347_v27  ;;  %v343_v35 = vcvt.s32.f32 %v199_v29  ;;  %v171_v36 = vunpack.c.3.s8 %v1077_v20  ;;  %v197_v37 = vunpack.c.0.s8 %v116_v4 }
  0x3e   :  { %v471_v39 = vpack.c.bf16 %v375_v31, %v372_v30  ;;  %v312_v40 = vcvt.s32.f32 %v168_v33  ;;  %v200_v41 = vunpack.c.1.s8 %v116_v4  ;;  %v222_v42 = vunpack.c.0.s8 %v123_v9  ;;  %v909_v30 = vld [vmem:[#allocation4 + $0x38] sm:$0xf]  ;;  %v919_v31 = vld [vmem:[#allocation4 + $0x40] sm:$0xf0] }
  0x3f   :  { %571 = vmatpush.bf16.msrb.mxu1 %v460_v5  ;;  %v454_v44 = vpack.c.bf16 %v343_v35, %v340_v32  ;;  %v315_v45 = vcvt.s32.f32 %v171_v36  ;;  %v341_v46 = vcvt.s32.f32 %v197_v37  ;;  %v225_v47 = vunpack.c.1.s8 %v123_v9  ;;  %v117_v36 = vld [vmem:[#allocation7 + $0x88] sm:$0xff] }
  0x40   :  { %643 = vmatpush.bf16.msrb.mxu0 %v461_v10  ;;  %712 = vmatpush.bf16.msrb.mxu3 %v471_v39  ;;  %v344_v48 = vcvt.s32.f32 %v200_v41  ;;  %v366_v49 = vcvt.s32.f32 %v222_v42  ;;  %v190_v50 = vunpack.c.2.s8 %v112_v38  ;;  %v193_v51 = vunpack.c.3.s8 %v112_v38 }
  0x41   :  { %v441_v52 = vpack.c.bf16 %v315_v45, %v312_v40  ;;  %v369_v53 = vcvt.s32.f32 %v225_v47  ;;  %v191_v54 = vunpack.c.2.s8 %v113_v43  ;;  %v194_v55 = vunpack.c.3.s8 %v113_v43 }
  0x42   :  { %557 = vmatmul.bf16.gmra.mxu0 %v1073_v12  ;;  %v455_v57 = vpack.c.bf16 %v344_v48, %v341_v46  ;;  %v334_v58 = vcvt.s32.f32 %v190_v50  ;;  %v337_v59 = vcvt.s32.f32 %v193_v51  ;;  %v162_v60 = vunpack.c.0.s8 %v1077_v20 }
  0x43   :  { %572 = vmatpush.bf16.msrb.mxu1 %v457_v26  ;;  %605 = vmatmul.bf16.gmra.mxu2 %v1075_v13  ;;  %v468_v61 = vpack.c.bf16 %v369_v53, %v366_v49  ;;  %v335_v62 = vcvt.s32.f32 %v191_v54  ;;  %v338_v63 = vcvt.s32.f32 %v194_v55  ;;  %v165_v0 = vunpack.c.1.s8 %v1077_v20  ;;  %v1090_v53 = vld [vmem:[#allocation7 + $0xf8] sm:$0xff] }
  0x44   :  { %629 = vmatmul.bf16.gmra.mxu3 %v1073_v12  ;;  %644 = vmatpush.bf16.msrb.mxu0 %v458_v34  ;;  %v451_v3 = vpack.c.bf16 %v337_v59, %v334_v58  ;;  %v306_v4 = vcvt.s32.f32 %v162_v60  ;;  %v216_v5 = vunpack.c.2.s8 %v120_v56  ;;  %v219_v6 = vunpack.c.3.s8 %v120_v56 }
  0x45   :  { %690 = vmatpush.bf16.msrb.mxu2 %v441_v52  ;;  %713 = vmatpush.bf16.msrb.mxu3 %v468_v61  ;;  %v452_v7 = vpack.c.bf16 %v338_v63, %v335_v62  ;;  %v309_v8 = vcvt.s32.f32 %v165_v0  ;;  %v184_v9 = vunpack.c.0.s8 %v112_v38  ;;  %v187_v10 = vunpack.c.1.s8 %v112_v38  ;;  %v102_v62 = vld [vmem:[#allocation7 + $0x10] sm:$0xff] }
  0x46   :  { %v360_v16 = vcvt.s32.f32 %v216_v5  ;;  %v363_v17 = vcvt.s32.f32 %v219_v6  ;;  %v1086_v18 = vor.u32 %v911_v1, %v879_v2  ;;  %v185_v19 = vunpack.c.0.s8 %v113_v43 }
  0x47   :  { %573 = vmatpush.bf16.msrb.mxu1 %v454_v44  ;;  %v438_v20 = vpack.c.bf16 %v309_v8, %v306_v4  ;;  %v328_v21 = vcvt.s32.f32 %v184_v9  ;;  %v331_v22 = vcvt.s32.f32 %v187_v10  ;;  %v188_v24 = vunpack.c.1.s8 %v113_v43  ;;  %v914_v8 = vld [vmem:[#allocation4 + $0x1c] sm:$0xf]  ;;  %v891_v9 = vld [vmem:[#allocation4 + $0x24] sm:$0xf0] }
  0x48   :  { %645 = vmatpush.bf16.msrb.mxu0 %v455_v57  ;;  %v465_v26 = vpack.c.bf16 %v363_v17, %v360_v16  ;;  %v329_v27 = vcvt.s32.f32 %v185_v19  ;;  %v275_v28 = vunpack.c.2.s8 %v134_v11  ;;  %v278_v29 = vunpack.c.3.s8 %v134_v11 }
  0x49   :  { %691 = vmatpush.bf16.msrb.mxu2 %v438_v20  ;;  %v448_v32 = vpack.c.bf16 %v331_v22, %v328_v21  ;;  %v332_v33 = vcvt.s32.f32 %v188_v24  ;;  %v210_v34 = vunpack.c.0.s8 %v120_v56  ;;  %v213_v35 = vunpack.c.1.s8 %v120_v56 }
  0x4a   :  { %714 = vmatpush.bf16.msrb.mxu3 %v465_v26  ;;  %v419_v37 = vcvt.s32.f32 %v275_v28  ;;  %v422_v38 = vcvt.s32.f32 %v278_v29  ;;  %v156_v39 = vunpack.c.2.s8 %v105_v25  ;;  %v159_v40 = vunpack.c.3.s8 %v105_v25  ;;  %v135_v28 = vld [vmem:[#allocation7 + $0x118] sm:$0xff] }
  0x4b   :  { %574 = vmatpush.bf16.msrb.mxu1 %v451_v3  ;;  %v449_v41 = vpack.c.bf16 %v332_v33, %v329_v27  ;;  %v354_v42 = vcvt.s32.f32 %v210_v34  ;;  %v357_v43 = vcvt.s32.f32 %v213_v35  ;;  %v1088_v44 = vor.u32 %v919_v31, %v909_v30  ;;  %v114_v3 = vld [vmem:[#allocation7 + $0x70] sm:$0xff] }
  0x4c   :  { %646 = vmatpush.bf16.msrb.mxu0 %v452_v7  ;;  %v494_v45 = vpack.c.bf16 %v422_v38, %v419_v37  ;;  %v300_v46 = vcvt.s32.f32 %v156_v39  ;;  %v303_v47 = vcvt.s32.f32 %v159_v40  ;;  %v204_v48 = vunpack.c.2.s8 %v117_v36 }
  0x4d   :  { %v462_v49 = vpack.c.bf16 %v357_v43, %v354_v42  ;;  %v207_v50 = vunpack.c.3.s8 %v117_v36  ;;  %v269_v51 = vunpack.c.0.s8 %v134_v11  ;;  %v272_v52 = vunpack.c.1.s8 %v134_v11 }
  0x4e   :  { %v435_v54 = vpack.c.bf16 %v303_v47, %v300_v46  ;;  %v348_v55 = vcvt.s32.f32 %v204_v48  ;;  %v150_v56 = vunpack.c.0.s8 %v105_v25  ;;  %v153_v57 = vunpack.c.1.s8 %v105_v25  ;;  %v128_v46 = vld [vmem:[#allocation7 + $0xe0] sm:$0xff] }
  0x4f   :  { %575 = vmatpush.bf16.msrb.mxu1 %v448_v32  ;;  %715 = vmatpush.bf16.msrb.mxu3 %v462_v49  ;;  %v351_v58 = vcvt.s32.f32 %v207_v50  ;;  %v413_v59 = vcvt.s32.f32 %v269_v51  ;;  %v416_v60 = vcvt.s32.f32 %v272_v52  ;;  %v198_v61 = vunpack.c.0.s8 %v117_v36  ;;  %v132_v51 = vld [vmem:[#allocation7 + $0x100] sm:$0xff] }
  0x50   :  { %647 = vmatpush.bf16.msrb.mxu0 %v449_v41  ;;  %v294_v63 = vcvt.s32.f32 %v150_v56  ;;  %v297_v0 = vcvt.s32.f32 %v153_v57  ;;  %v201_v1 = vunpack.c.1.s8 %v117_v36  ;;  %v263_v2 = vunpack.c.2.s8 %v1090_v53  ;;  %692 = vmatpush.bf16.msrb.mxu2 %v435_v54 }
  0x51   :  { %v459_v4 = vpack.c.bf16 %v351_v58, %v348_v55  ;;  %v491_v5 = vpack.c.bf16 %v416_v60, %v413_v59  ;;  %v342_v6 = vcvt.s32.f32 %v198_v61  ;;  %v266_v7 = vunpack.c.3.s8 %v1090_v53 }
  0x52   :  { %576 = vmatmul.bf16.vlgmr.msrb.gmra.mxu1 %v1086_v18  ;;  %v432_v10 = vpack.c.bf16 %v297_v0, %v294_v63  ;;  %v345_v11 = vcvt.s32.f32 %v201_v1  ;;  %v407_v16 = vcvt.s32.f32 %v263_v2  ;;  %v144_v17 = vunpack.c.2.s8 %v102_v62 }
  0x53   :  { %664 = vmatpush.bf16.msra.mxu1 %v494_v45  ;;  %610 = vmatmul.bf16.gmra.mxu2 %v1088_v44  ;;  %v410_v19 = vcvt.s32.f32 %v266_v7  ;;  %v147_v20 = vunpack.c.3.s8 %v102_v62  ;;  %v192_v21 = vunpack.c.2.s8 %v114_v3  ;;  %v195_v22 = vunpack.c.3.s8 %v114_v3 }
  0x54   :  { %634 = vmatmul.bf16.gmra.mxu3 %v1061_v23  ;;  %648 = vmatmul.bf16.vlgmr.msrb.gmra.mxu0 %v1086_v18  ;;  %v456_v24 = vpack.c.bf16 %v345_v11, %v342_v6  ;;  %v288_v25 = vcvt.s32.f32 %v144_v17  ;;  %v1098_v26 = vor.u32 %v914_v8, %v891_v9  ;;  %v138_v27 = vunpack.c.0.s8 %v102_v62  ;;  %v129_v9 = vld [vmem:[#allocation7 + $0xe8] sm:$0xff] }
  0x55   :  { %716 = vmatpush.bf16.msrb.mxu3 %v459_v4  ;;  %693 = vmatpush.bf16.msrb.mxu2 %v432_v10  ;;  %v488_v29 = vpack.c.bf16 %v410_v19, %v407_v16  ;;  %v291_v30 = vcvt.s32.f32 %v147_v20  ;;  %v336_v31 = vcvt.s32.f32 %v192_v21  ;;  %v339_v32 = vcvt.s32.f32 %v195_v22  ;;  %v125_v4 = vld [vmem:[#allocation7 + $0xc8] sm:$0xff] }
  0x56   :  { %v141_v33 = vunpack.c.1.s8 %v102_v62  ;;  %v282_v34 = vcvt.s32.f32 %v138_v27  ;;  %v186_v35 = vunpack.c.0.s8 %v114_v3  ;;  %v189_v36 = vunpack.c.1.s8 %v114_v3 }
  0x57   :  { %665 = vmatpush.bf16.msra.mxu1 %v491_v5  ;;  %v429_v37 = vpack.c.bf16 %v291_v30, %v288_v25  ;;  %v453_v38 = vpack.c.bf16 %v339_v32, %v336_v31  ;;  %v276_v39 = vunpack.c.2.s8 %v135_v28  ;;  %v279_v40 = vunpack.c.3.s8 %v135_v28 }
  0x58   :  { %v285_v41 = vcvt.s32.f32 %v141_v33  ;;  %v330_v42 = vcvt.s32.f32 %v186_v35  ;;  %v333_v43 = vcvt.s32.f32 %v189_v36  ;;  %v257_v45 = vunpack.c.0.s8 %v1090_v53 }
  0x59   :  { %717 = vmatpush.bf16.msrb.mxu3 %v456_v24  ;;  %694 = vmatpush.bf16.msrb.mxu2 %v429_v37  ;;  %v420_v47 = vcvt.s32.f32 %v276_v39  ;;  %v423_v48 = vcvt.s32.f32 %v279_v40  ;;  %v260_v49 = vunpack.c.1.s8 %v1090_v53  ;;  %v270_v50 = vunpack.c.0.s8 %v135_v28  ;;  %v126_v39 = vld [vmem:[#allocation7 + $0xd0] sm:$0xff] }
  0x5a   :  { %v426_v52 = vpack.c.bf16 %v285_v41, %v282_v34  ;;  %v450_v54 = vpack.c.bf16 %v333_v43, %v330_v42  ;;  %v401_v55 = vcvt.s32.f32 %v257_v45  ;;  %v273_v56 = vunpack.c.1.s8 %v135_v28  ;;  %v917_v42 = vld [vmem:[#allocation4 + $0x34] sm:$0xf]  ;;  %v903_v43 = vld [vmem:[#allocation4 + $0x3c] sm:$0xf0] }
  0x5b   :  { %666 = vmatpush.bf16.msra.mxu1 %v488_v29  ;;  %v495_v57 = vpack.c.bf16 %v423_v48, %v420_v47  ;;  %v404_v58 = vcvt.s32.f32 %v260_v49  ;;  %v414_v59 = vcvt.s32.f32 %v270_v50  ;;  %v251_v60 = vunpack.c.2.s8 %v128_v46 }
  0x5c   :  { %v417_v61 = vcvt.s32.f32 %v273_v56  ;;  %v254_v62 = vunpack.c.3.s8 %v128_v46  ;;  %v264_v63 = vunpack.c.2.s8 %v132_v51  ;;  %v267_v0 = vunpack.c.3.s8 %v132_v51 }
  0x5d   :  { %718 = vmatpush.bf16.msrb.mxu3 %v453_v38  ;;  %695 = vmatpush.bf16.msrb.mxu2 %v426_v52  ;;  %v485_v1 = vpack.c.bf16 %v404_v58, %v401_v55  ;;  %v395_v2 = vcvt.s32.f32 %v251_v60  ;;  %v245_v53 = vunpack.c.0.s8 %v128_v46  ;;  %v248_v3 = vunpack.c.1.s8 %v128_v46 }
  0x5e   :  { %736 = vmatpush.bf16.msra.mxu0 %v495_v57  ;;  %v492_v5 = vpack.c.bf16 %v417_v61, %v414_v59  ;;  %v398_v6 = vcvt.s32.f32 %v254_v62  ;;  %v408_v7 = vcvt.s32.f32 %v264_v63  ;;  %v411_v8 = vcvt.s32.f32 %v267_v0 }
  0x5f   :  { %667 = vmatpush.bf16.msra.mxu1 %v485_v1  ;;  %v389_v10 = vcvt.s32.f32 %v245_v53  ;;  %v392_v11 = vcvt.s32.f32 %v248_v3  ;;  %v258_v16 = vunpack.c.0.s8 %v132_v51  ;;  %v261_v19 = vunpack.c.1.s8 %v132_v51 }
  0x60   :  { %v482_v17 = vpack.c.bf16 %v398_v6, %v395_v2  ;;  %v239_v20 = vunpack.c.2.s8 %v125_v4  ;;  %v489_v21 = vpack.c.bf16 %v411_v8, %v408_v7  ;;  %v242_v24 = vunpack.c.3.s8 %v125_v4 }
  0x61   :  { %928 = vmatpush.bf16.msra.mxu2 %v495_v57  ;;  %719 = vmatpush.bf16.msrb.mxu3 %v450_v54  ;;  %v402_v22 = vcvt.s32.f32 %v258_v16  ;;  %v252_v25 = vunpack.c.2.s8 %v129_v9  ;;  %v405_v27 = vcvt.s32.f32 %v261_v19  ;;  %v255_v28 = vunpack.c.3.s8 %v129_v9 }
  0x62   :  { %581 = vmatmul.bf16.gmra.mxu1 %v1098_v26  ;;  %737 = vmatpush.bf16.msra.mxu0 %v492_v5  ;;  %v479_v29 = vpack.c.bf16 %v392_v11, %v389_v10  ;;  %v383_v30 = vcvt.s32.f32 %v239_v20  ;;  %v386_v31 = vcvt.s32.f32 %v242_v24  ;;  %v246_v32 = vunpack.c.0.s8 %v129_v9 }
  0x63   :  { %696 = vmatmul.bf16.vlgmr.msrb.gmra.mxu2 %v1057_v14  ;;  %668 = vmatpush.bf16.msra.mxu1 %v482_v17  ;;  %v249_v33 = vunpack.c.1.s8 %v129_v9  ;;  %v233_v34 = vunpack.c.0.s8 %v125_v4  ;;  %v486_v35 = vpack.c.bf16 %v405_v27, %v402_v22  ;;  %v396_v36 = vcvt.s32.f32 %v252_v25 }
  0x64   :  { %720 = vmatmul.bf16.vlgmr.msrb.gmra.mxu3 %v1086_v18  ;;  %653 = vmatmul.bf16.gmra.mxu0 %v1098_v26  ;;  %v399_v37 = vcvt.s32.f32 %v255_v28  ;;  %v236_v38 = vunpack.c.1.s8 %v125_v4  ;;  %v476_v14 = vpack.c.bf16 %v386_v31, %v383_v30  ;;  %v390_v40 = vcvt.s32.f32 %v246_v32 }
  0x65   :  { %929 = vmatpush.bf16.msra.mxu2 %v492_v5  ;;  %v393_v18 = vcvt.s32.f32 %v249_v33  ;;  %v377_v41 = vcvt.s32.f32 %v233_v34  ;;  %v240_v47 = vunpack.c.2.s8 %v126_v39  ;;  %v243_v48 = vunpack.c.3.s8 %v126_v39 }
  0x66   :  { %738 = vmatpush.bf16.msra.mxu0 %v489_v21  ;;  %v483_v45 = vpack.c.bf16 %v399_v37, %v396_v36  ;;  %v380_v46 = vcvt.s32.f32 %v236_v38  ;;  %v906_v49 = vor.u32 %v917_v42, %v903_v43  ;;  %v234_v51 = vunpack.c.0.s8 %v126_v39 }
  0x67   :  { %669 = vmatpush.bf16.msra.mxu1 %v479_v29  ;;  %v480_v50 = vpack.c.bf16 %v393_v18, %v390_v40  ;;  %v384_v54 = vcvt.s32.f32 %v240_v47  ;;  %v387_v55 = vcvt.s32.f32 %v243_v48  ;;  %v237_v56 = vunpack.c.1.s8 %v126_v39 }
  0x68   :  { %v473_v52 = vpack.c.bf16 %v380_v46, %v377_v41  ;;  %v378_v58 = vcvt.s32.f32 %v234_v51 }
  0x69   :  { %930 = vmatpush.bf16.msra.mxu2 %v489_v21  ;;  %v477_v57 = vpack.c.bf16 %v387_v55, %v384_v54  ;;  %v381_v59 = vcvt.s32.f32 %v237_v56 }
  0x6a   :  { %739 = vmatpush.bf16.msra.mxu0 %v486_v35 }
  0x6b   :  { %670 = vmatpush.bf16.msra.mxu1 %v476_v14  ;;  %v474_v60 = vpack.c.bf16 %v381_v59, %v378_v58 }
  0x6d   :  { %931 = vmatpush.bf16.msra.mxu2 %v486_v35 }
  0x6e   :  { %740 = vmatpush.bf16.msra.mxu0 %v483_v45 }
  0x6f   :  { %671 = vmatpush.bf16.msra.mxu1 %v473_v52 }
  0x71   :  { %932 = vmatpush.bf16.msra.mxu2 %v483_v45 }
  0x72   :  { %586 = vmatmul.bf16.gmra.mxu1 %v906_v49  ;;  %741 = vmatpush.bf16.msra.mxu0 %v480_v50 }
  0x73   :  { %701 = vmatmul.bf16.gmra.mxu2 %v1073_v12 }
  0x74   :  { %725 = vmatmul.bf16.gmra.mxu3 %v1098_v26  ;;  %658 = vmatmul.bf16.gmra.mxu0 %v906_v49 }
  0x75   :  { %933 = vmatpush.bf16.msra.mxu2 %v480_v50 }
  0x76   :  { %742 = vmatpush.bf16.msra.mxu0 %v477_v57 }
  0x79   :  { %934 = vmatpush.bf16.msra.mxu2 %v477_v57 }
  0x7a   :  { %743 = vmatpush.bf16.msra.mxu0 %v474_v60 }
  0x7d   :  { %935 = vmatpush.bf16.msra.mxu2 %v474_v60 }
  0x82   :  { %672 = vmatmul.bf16.vlgmr.msra.gmra.mxu1 %v1059_v15 }
  0x83   :  { %706 = vmatmul.bf16.gmra.mxu2 %v1061_v23 }
  0x84   :  { %730 = vmatmul.bf16.gmra.mxu3 %v906_v49  ;;  %744 = vmatmul.bf16.vlgmr.msra.gmra.mxu0 %v1059_v15 }
  0x92   :  { %677 = vmatmul.bf16.gmra.mxu1 %v1075_v13 }
  0x93   :  { %754 = vmatmul.bf16.vlgmr.msra.gmra.mxu2 %v1088_v44 }
  0x94   :  { %749 = vmatmul.bf16.gmra.mxu0 %v1075_v13 }
  0xa2   :  { %682 = vmatmul.bf16.gmra.mxu1 %v1088_v44  ;;  %v1124_v44 = vstv %s1162_s0  ;;  %s1027_s0 = smov [#allocation9]  }
  0xa3   :  { %s859_s26 = sshll.u32 %s1027_s0, 4  ;;  %s860_s26 = int_to_ptr.vmem [resolvable:$true] %s859_s26 }
  0xaf   :  { %v553_v12 = vpop.f32.mrf.mxu0  ;;  %v563_v63 = vpop.f32.mrf.mxu1 }
  0xb6   :  { %v601_v26 = vpop.f32.mrf.mxu2 }
  0xb7   :  { %v625_v61 = vpop.f32.mrf.mxu3  ;;  %v555_v62 = vpop.f32.mrf.mxu0 }
  0xb8   :  { %v565_v2 = vpop.f32.mrf.mxu1 }
  0xbe   :  { %v603_v0 = vpop.f32.mrf.mxu2 }
  0xbf   :  { %v1115_v1 = vpop.f32.mrf.mxu3  ;;  %v558_v23 = vpop.f32.mrf.mxu0 }
  0xc6   :  { %v606_v53 = vpop.f32.mrf.mxu2 }
  0xc7   :  { %v1117_v15 = vpop.f32.mrf.mxu3  ;;  %v560_v3 = vpop.f32.mrf.mxu0 }
  0xce   :  { %v608_v6 = vpop.f32.mrf.mxu2 }
  0xcf   :  { %v577_v4 = vpop.f32.mrf.mxu1  ;;  %v1119_v13 = vpop.f32.mrf.mxu3 }
  0xd0   :  { %v578_v5 = vadd.f32 %v577_v4, %v553_v12 }
  0xd1   :  { %v649_v8 = vpop.f32.mrf.mxu0 }
  0xd2   :  { %v602_v7 = vadd.f32 %v601_v26, %v578_v5  ;;  %v650_v50 = vadd.f32 %v649_v8, %v625_v61 }
  0xd4   :  { %v819_v9 = vmul.f32 %v1124_v44, %v602_v7 }
  0xd6   :  { %837 = vst [vmem:[#allocation9] sm:$0xff] %v819_v9  ;;  %v611_v16 = vpop.f32.mrf.mxu2 }
  0xd7   :  { %v579_v10 = vpop.f32.mrf.mxu1  ;;  %v1127_v17 = vpop.f32.mrf.mxu3 }
  0xd8   :  { %v580_v11 = vadd.f32 %v579_v10, %v555_v62 }
  0xd9   :  { %v651_v20 = vpop.f32.mrf.mxu0 }
  0xda   :  { %v604_v19 = vadd.f32 %v603_v0, %v580_v11  ;;  %v652_v60 = vadd.f32 %v651_v20, %v1115_v1 }
  0xdc   :  { %v822_v21 = vmul.f32 %v1124_v44, %v604_v19 }
  0xde   :  { %840 = vst [vmem:[#allocation9 + $0x18] sm:$0xff] %v822_v21  ;;  %v613_v25 = vpop.f32.mrf.mxu2 }
  0xdf   :  { %v582_v22 = vpop.f32.mrf.mxu1  ;;  %v1130_v27 = vpop.f32.mrf.mxu3 }
  0xe0   :  { %v583_v24 = vadd.f32 %v582_v22, %v558_v23 }
  0xe1   :  { %v654_v29 = vpop.f32.mrf.mxu0 }
  0xe2   :  { %v607_v28 = vadd.f32 %v606_v53, %v583_v24 }
  0xe4   :  { %v825_v30 = vmul.f32 %v1124_v44, %v607_v28 }
  0xe6   :  { %843 = vst [vmem:[#allocation9 + $0x30] sm:$0xff] %v825_v30  ;;  %v697_v33 = vpop.f32.mrf.mxu2 }
  0xe7   :  { %v584_v31 = vpop.f32.mrf.mxu1  ;;  %v721_v35 = vpop.f32.mrf.mxu3 }
  0xe8   :  { %v585_v32 = vadd.f32 %v584_v31, %v560_v3  ;;  %v722_v56 = vadd.f32 %v721_v35, %v697_v33  ;;  %v655_v3 = vadd.f32 %v654_v29, %v1117_v15 }
  0xe9   :  { %v656_v36 = vpop.f32.mrf.mxu0 }
  0xea   :  { %v609_v34 = vadd.f32 %v608_v6, %v585_v32 }
  0xec   :  { %v828_v37 = vmul.f32 %v1124_v44, %v609_v34 }
  0xee   :  { %846 = vst [vmem:[#allocation9 + $0x48] sm:$0xff] %v828_v37  ;;  %v699_v14 = vpop.f32.mrf.mxu2 }
  0xef   :  { %v587_v38 = vpop.f32.mrf.mxu1  ;;  %v723_v42 = vpop.f32.mrf.mxu3 }
  0xf0   :  { %v588_v39 = vadd.f32 %v587_v38, %v563_v63  ;;  %v724_v0 = vadd.f32 %v723_v42, %v699_v14 }
  0xf1   :  { %v659_v18 = vpop.f32.mrf.mxu0 }
  0xf2   :  { %v612_v40 = vadd.f32 %v611_v16, %v588_v39  ;;  %v657_v16 = vadd.f32 %v656_v36, %v1119_v13  ;;  %v660_v13 = vadd.f32 %v659_v18, %v1127_v17 }
  0xf4   :  { %v831_v41 = vmul.f32 %v1124_v44, %v612_v40 }
  0xf6   :  { %849 = vst [vmem:[#allocation9 + $0x60] sm:$0xff] %v831_v41  ;;  %v702_v46 = vpop.f32.mrf.mxu2 }
  0xf7   :  { %v589_v43 = vpop.f32.mrf.mxu1  ;;  %v726_v51 = vpop.f32.mrf.mxu3 }
  0xf8   :  { %v590_v45 = vadd.f32 %v589_v43, %v565_v2  ;;  %v727_v7 = vadd.f32 %v726_v51, %v702_v46 }
  0xf9   :  { %v1135_v48 = vpop.f32.mrf.mxu0 }
  0xfa   :  { %v614_v47 = vadd.f32 %v613_v25, %v590_v45  ;;  %v662_v40 = vadd.f32 %v1135_v48, %v1130_v27 }
  0xfc   :  { %v834_v49 = vmul.f32 %v1124_v44, %v614_v47 }
  0xfe   :  { %852 = vst [vmem:[#allocation9 + $0x78] sm:$0xff] %v834_v49  ;;  %v704_v55 = vpop.f32.mrf.mxu2 }
  0xff   :  { %v673_v52 = vpop.f32.mrf.mxu1  ;;  %v728_v62 = vpop.f32.mrf.mxu3 }
 0x100   :  { %v674_v54 = vadd.f32 %v673_v52, %v650_v50  ;;  %v729_v25 = vadd.f32 %v728_v62, %v704_v55 }
 0x101   :  { %v745_v58 = vpop.f32.mrf.mxu0 }
 0x102   :  { %v820_v57 = vmul.f32 %v1124_v44, %v674_v54  ;;  %v746_v59 = vadd.f32 %v745_v58, %v722_v56 }
 0x104   :  { %838 = vst [vmem:[#allocation9 + $0x8] sm:$0xff] %v820_v57  ;;  %v821_v12 = vmul.f32 %v1124_v44, %v746_v59 }
 0x106   :  { %839 = vst [vmem:[#allocation9 + $0x10] sm:$0xff] %v821_v12  ;;  %v707_v61 = vpop.f32.mrf.mxu2 }
 0x107   :  { %v675_v26 = vpop.f32.mrf.mxu1  ;;  %v731_v8 = vpop.f32.mrf.mxu3 }
 0x108   :  { %v676_v63 = vadd.f32 %v675_v26, %v652_v60  ;;  %v732_v20 = vadd.f32 %v731_v8, %v707_v61 }
 0x109   :  { %v747_v2 = vpop.f32.mrf.mxu0 }
 0x10a   :  { %v823_v23 = vmul.f32 %v1124_v44, %v676_v63  ;;  %v748_v53 = vadd.f32 %v747_v2, %v724_v0 }
 0x10c   :  { %841 = vst [vmem:[#allocation9 + $0x20] sm:$0xff] %v823_v23  ;;  %v824_v4 = vmul.f32 %v1124_v44, %v748_v53 }
 0x10e   :  { %842 = vst [vmem:[#allocation9 + $0x28] sm:$0xff] %v824_v4  ;;  %v709_v6 = vpop.f32.mrf.mxu2 }
 0x10f   :  { %v678_v5 = vpop.f32.mrf.mxu1  ;;  %v733_v31 = vpop.f32.mrf.mxu3 }
 0x110   :  { %v679_v1 = vadd.f32 %v678_v5, %v655_v3  ;;  %v734_v34 = vadd.f32 %v733_v31, %v709_v6 }
 0x111   :  { %v750_v10 = vpop.f32.mrf.mxu0 }
 0x112   :  { %v826_v9 = vmul.f32 %v1124_v44, %v679_v1  ;;  %v751_v11 = vadd.f32 %v750_v10, %v727_v7 }
 0x114   :  { %844 = vst [vmem:[#allocation9 + $0x38] sm:$0xff] %v826_v9  ;;  %v827_v19 = vmul.f32 %v1124_v44, %v751_v11 }
 0x116   :  { %845 = vst [vmem:[#allocation9 + $0x40] sm:$0xff] %v827_v19  ;;  %v755_v22 = vpop.f32.mrf.mxu2 }
 0x117   :  { %v680_v21 = vpop.f32.mrf.mxu1  ;;  %v756_v24 = vadd.f32 %v755_v22, %v732_v20 }
 0x118   :  { %v681_v15 = vadd.f32 %v680_v21, %v657_v16 }
 0x119   :  { %v833_v29 = vmul.f32 %v1124_v44, %v756_v24  ;;  %v752_v30 = vpop.f32.mrf.mxu0 }
 0x11a   :  { %v829_v28 = vmul.f32 %v1124_v44, %v681_v15  ;;  %v753_v32 = vadd.f32 %v752_v30, %v729_v25 }
 0x11b   :  { %851 = vst [vmem:[#allocation9 + $0x70] sm:$0xff] %v833_v29 }
 0x11c   :  { %847 = vst [vmem:[#allocation9 + $0x50] sm:$0xff] %v829_v28  ;;  %v830_v33 = vmul.f32 %v1124_v44, %v753_v32 }
 0x11e   :  { %848 = vst [vmem:[#allocation9 + $0x58] sm:$0xff] %v830_v33  ;;  %v757_v37 = vpop.f32.mrf.mxu2 }
 0x11f   :  { %v683_v35 = vpop.f32.mrf.mxu1  ;;  %v758_v38 = vadd.f32 %v757_v37, %v734_v34 }
 0x120   :  { %v684_v36 = vadd.f32 %v683_v35, %v660_v13 }
 0x121   :  { %v836_v14 = vmul.f32 %v1124_v44, %v758_v38 }
 0x122   :  { %v832_v39 = vmul.f32 %v1124_v44, %v684_v36 }
 0x123   :  { %854 = vst [vmem:[#allocation9 + $0x88] sm:$0xff] %v836_v14 }
 0x124   :  { %850 = vst [vmem:[#allocation9 + $0x68] sm:$0xff] %v832_v39 }
 0x127   :  { %v685_v41 = vpop.f32.mrf.mxu1 }
 0x128   :  { %v686_v17 = vadd.f32 %v685_v41, %v662_v40 }
 0x12a   :  { %v835_v18 = vmul.f32 %v1124_v44, %v686_v17 }
 0x12c   :  { %853 = vst [vmem:[#allocation9 + $0x80] sm:$0xff] %v835_v18 }
 0x12d   :  { %867 = dma.vmem_to_hbm [thread:$0]  %s860_s26, 2304, %s862_s29, [#allocation6], %s1025_s24, %s1025_s24, %s1026_s25  }
 0x12e   :  { %1019 = dma.done.wait [#allocation6], 2304  }
 0x12f   :  { %1020 = vsyncadd [#allocation6], 4294964992 }
 0x130   :  { %872 = vsyncpa [#allocation5], 1 }
 0x131   :  { %873 = vsyncpa [#allocation8], 1 }
 0x132   :  { %874 = vsyncpa [#allocation6], 1 }

</bundles_post_ra>
